<compile_context>
chip_gen: v7x
topology: tpu7x:2x2x1
jax: 0.10.0
libtpu: 0.0.40
codegen_flags: <defaults>
</compile_context>

<pallas_src>
import jax
import jax.numpy as jnp
from jax.experimental import pallas as pl
from jax.experimental.pallas import tpu as pltpu


def _qnet_kernel(x_ref, w1t_ref, b1_ref, w2t_ref, b2_ref, o_ref):
    # linear1: (TB, I) @ (I, H) + (1, H)   -- weights already transposed in
    # the wrapper, so the MXU is fed directly (no in-kernel relayout).
    h = jnp.dot(x_ref[...], w1t_ref[...], preferred_element_type=jnp.float32)
    h = jnp.maximum(h + b1_ref[...], 0.0)          # ReLU
    # linear2: (TB, H) @ (H, O) + (1, O)
    out = jnp.dot(h, w2t_ref[...], preferred_element_type=jnp.float32)
    o_ref[...] = (out + b2_ref[...]).astype(o_ref.dtype)


def linear_qnet_forward(x, w1, b1, w2, b2, *, batch_tile=256):
    """Forward pass of Linear_QNet.

    x:  (B, I)   float32
    w1: (H, I), b1: (H,)    -- PyTorch nn.Linear convention (out, in)
    w2: (O, H), b2: (O,)
    returns (B, O)
    """
    B, I = x.shape
    H = w1.shape[0]
    O = w2.shape[0]

    # One-time, trace-level transposes: kernel sees (I, H) / (H, O).
    w1t = w1.T
    w2t = w2.T
    b1_2d = b1.reshape(1, H)
    b2_2d = b2.reshape(1, O)

    if B <= batch_tile:
        # Tiny / one-shot batch: no grid, no pipelining machinery.  Every
        # operand is a full array in VMEM; single program.
        return pl.pallas_call(
            _qnet_kernel,
            out_shape=jax.ShapeDtypeStruct((B, O), x.dtype),
            in_specs=[pl.BlockSpec(memory_space=pltpu.MemorySpace.VMEM)] * 5,
            out_specs=pl.BlockSpec(memory_space=pltpu.MemorySpace.VMEM),
        )(x, w1t, b1_2d, w2t, b2_2d)

    # Large batch: grid over batch tiles.  Weights / biases map to block
    # (0,0) at every step so Pallas keeps them VMEM-resident (no re-DMA);
    # batch axis marked "parallel" (megacore / v7x dual-TC sharding).
    TB = batch_tile
    pad = (-B) % TB
    x_p = jnp.pad(x, ((0, pad), (0, 0))) if pad else x
    Bp = B + pad

    out = pl.pallas_call(
        _qnet_kernel,
        out_shape=jax.ShapeDtypeStruct((Bp, O), x.dtype),
        grid=(Bp // TB,),
        in_specs=[
            pl.BlockSpec((TB, I), lambda i: (i, 0)),   # x tile streams
            pl.BlockSpec((I, H), lambda i: (0, 0)),    # w1^T resident
            pl.BlockSpec((1, H), lambda i: (0, 0)),    # b1 resident
            pl.BlockSpec((H, O), lambda i: (0, 0)),    # w2^T resident
            pl.BlockSpec((1, O), lambda i: (0, 0)),    # b2 resident
        ],
        out_specs=pl.BlockSpec((TB, O), lambda i: (i, 0)),
        compiler_params=pltpu.CompilerParams(
            dimension_semantics=("parallel",)),
    )(x_p, w1t, b1_2d, w2t, b2_2d)
    return out[:B]


def init_params(key, input_size, hidden_size, output_size, dtype=jnp.float32):
    """Deterministic init matching the Linear_QNet parameter shapes used by
    forward().  (conv1/conv2 exist in __init__ but are unused by forward.)"""
    ks = jax.random.split(key, 4)

    def uniform_fan_in(k, shape, fan_in):
        bound = 1.0 / jnp.sqrt(jnp.float32(fan_in))
        return jax.random.uniform(k, shape, dtype, -bound, bound)

    return {
        "w1": uniform_fan_in(ks[0], (hidden_size, input_size), input_size),
        "b1": uniform_fan_in(ks[1], (hidden_size,), input_size),
        "w2": uniform_fan_in(ks[2], (output_size, hidden_size), hidden_size),
        "b2": uniform_fan_in(ks[3], (output_size,), hidden_size),
    }


def _reference(x, p):
    h = jnp.maximum(x @ p["w1"].T + p["b1"], 0.0)
    return h @ p["w2"].T + p["b2"]


if __name__ == "__main__":
    # Shapes consistent with the module: Linear_QNet(input_size=11,
    # hidden_size=32, output_size=3).
    input_size, hidden_size, output_size = 11, 32, 3

    key = jax.random.PRNGKey(0)
    k_param, k_x_small, k_x_big = jax.random.split(key, 3)
    params = init_params(k_param, input_size, hidden_size, output_size)

    # --- small batch (gridless single-program path) ---
    batch = 2
    x_small = jax.random.normal(k_x_small, (batch, input_size), jnp.float32)
    out_small = linear_qnet_forward(x_small, params["w1"], params["b1"],
                                    params["w2"], params["b2"])
    out_small = jax.block_until_ready(out_small)
    ref_small = _reference(x_small, params)
    assert out_small.shape == (batch, output_size)
    assert jnp.allclose(out_small, ref_small, atol=1e-5, rtol=1e-5)

    # --- larger batch (batch-tiled grid path, non-multiple of tile) ---
    big_batch = 600
    x_big = jax.random.normal(k_x_big, (big_batch, input_size), jnp.float32)
    out_big = linear_qnet_forward(x_big, params["w1"], params["b1"],
                                  params["w2"], params["b2"], batch_tile=256)
    out_big = jax.block_until_ready(out_big)
    ref_big = _reference(x_big, params)
    assert out_big.shape == (big_batch, output_size)
    assert jnp.allclose(out_big, ref_big, atol=1e-5, rtol=1e-5)

    print("KERNEL_OK")
</pallas_src>

<mosaic_0001>
module attributes {stable_mosaic.version = 11 : i64} {
  func.func @_qnet_kernel(%arg0: memref<2x11xf32, #tpu.memory_space<vmem>>, %arg1: memref<11x32xf32, #tpu.memory_space<vmem>>, %arg2: memref<1x32xf32, #tpu.memory_space<vmem>>, %arg3: memref<32x3xf32, #tpu.memory_space<vmem>>, %arg4: memref<1x3xf32, #tpu.memory_space<vmem>>, %arg5: memref<2x3xf32, #tpu.memory_space<vmem>>) attributes {dimension_semantics = [], scalar_prefetch = 0 : i64, scratch_operands = 0 : i64, tpu.core_type = #tpu.core_type<tc>} {
    %c0 = arith.constant 0 : index
    %c0_0 = arith.constant 0 : index
    %0 = vector.load %arg0[%c0, %c0_0] : memref<2x11xf32, #tpu.memory_space<vmem>>, vector<2x11xf32>
    %c0_1 = arith.constant 0 : index
    %c0_2 = arith.constant 0 : index
    %1 = vector.load %arg1[%c0_1, %c0_2] : memref<11x32xf32, #tpu.memory_space<vmem>>, vector<11x32xf32>
    %cst = arith.constant dense<0.000000e+00> : vector<2x32xf32>
    %2 = tpu.matmul %0, %1, %cst {dimension_numbers = #tpu.dot_dimension_numbers<[1], [0], [0], [1], [0, 0, 1, 1], [], []>} : vector<2x11xf32>, vector<11x32xf32>, vector<2x32xf32> -> vector<2x32xf32>
    %c0_3 = arith.constant 0 : index
    %c0_4 = arith.constant 0 : index
    %3 = vector.load %arg2[%c0_3, %c0_4] : memref<1x32xf32, #tpu.memory_space<vmem>>, vector<1x32xf32>
    %4 = vector.broadcast %3 : vector<1x32xf32> to vector<2x32xf32>
    %5 = arith.addf %2, %4 : vector<2x32xf32>
    %cst_5 = arith.constant 0.000000e+00 : f32
    %6 = vector.broadcast %cst_5 : f32 to vector<2x32xf32>
    %7 = arith.maximumf %5, %6 : vector<2x32xf32>
    %c0_6 = arith.constant 0 : index
    %c0_7 = arith.constant 0 : index
    %8 = vector.load %arg3[%c0_6, %c0_7] : memref<32x3xf32, #tpu.memory_space<vmem>>, vector<32x3xf32>
    %cst_8 = arith.constant dense<0.000000e+00> : vector<2x3xf32>
    %9 = tpu.matmul %7, %8, %cst_8 {dimension_numbers = #tpu.dot_dimension_numbers<[1], [0], [0], [1], [0, 0, 1, 1], [], []>} : vector<2x32xf32>, vector<32x3xf32>, vector<2x3xf32> -> vector<2x3xf32>
    %c0_9 = arith.constant 0 : index
    %c0_10 = arith.constant 0 : index
    %10 = vector.load %arg4[%c0_9, %c0_10] : memref<1x3xf32, #tpu.memory_space<vmem>>, vector<1x3xf32>
    %11 = vector.broadcast %10 : vector<1x3xf32> to vector<2x3xf32>
    %12 = arith.addf %9, %11 : vector<2x3xf32>
    %c0_11 = arith.constant 0 : index
    %c0_12 = arith.constant 0 : index
    %13 = vector.load %arg5[%c0_11, %c0_12] : memref<2x3xf32, #tpu.memory_space<vmem>>, vector<2x3xf32>
    tpu.vector_store %arg5[%c0_11, %c0_12], %12 {strides = array<i32>} : memref<2x3xf32, #tpu.memory_space<vmem>>, vector<2x3xf32>,
    return
  }
}

</mosaic_0001>

<bundles_post_ra>
// kernel: tpu_custom_call.1
= control target key start
LH: loop header
LB: loop body
LE: loop exit
PB: predicated region body
PF: predicated region fallthrough
CT: control target
= control target key end

     0   :  { %vm35_vm0 = vcmask 1042432   ;;  %v281_v2 = vmov 0.0|0.0   ;;  %vm282_vm1 = vmmov 1   ;;  %vm283_vm3 = vmmov 0   ;;  %s355_s0 = inlined_call_operand.vmem [shape: f32[2,11], index: 0, kind: input, shape index: {}]   ;;  %s356_s1 = inlined_call_operand.vmem [shape: f32[11,32], index: 1, kind: input, shape index: {}]   ;;  %s357_s2 = inlined_call_operand.vmem [shape: f32[1,32], index: 2, kind: input, shape index: {}]   ;;  %s358_s3 = inlined_call_operand.vmem [shape: f32[32,3], index: 3, kind: input, shape index: {}]   ;;  %s359_s4 = inlined_call_operand.vmem [shape: f32[1,3], index: 4, kind: input, shape index: {}]   ;;  %s360_s5 = inlined_call_operand.hbm [shape: f32[2,3], index: 5, kind: output, shape index: {}]  }
   0x1   :  { %v22_v0 = vld [vmem:[%s356_s1] sm:$0xff]  ;;  %v23_v1 = vld [vmem:[%s356_s1 + $0x8] sm:$0x7]  ;;  %242 = vmatprep.subr.bf16.mxu0 %v281_v2  ;;  %vm244_vm2 = vmpackc.low %vm35_vm0, %vm282_vm1  ;;  %246 = vmatprep.subr.bf16.mxu1 %v281_v2  ;;  %v284_v5 = vmov 0.0  }
   0x2   :  { %v243_v3 = vpack.c.bf16 %v23_v1, %v22_v0  ;;  %v110_v4 = vld [vmem:[%s358_s3] sm:$0xff]  ;;  %228 = vmatprep.mubr.msk.f32.mxu0 %vm283_vm3, %v284_v5  ;;  %v111_v6 = vld [vmem:[%s358_s3 + $0x8] sm:$0xff]  ;;  %239 = vmatprep.mubr.msk.f32.mxu1 %vm283_vm3, %v284_v5 }
   0x3   :  { %10 = vsyncpa [#allocation3], 0  ;;  %v21_v7 = vld [vmem:[%s355_s0] sm:$0x3]  ;;  %vm31_vm4 = vcmask 89088   ;;  %v247_v8 = vpack.c.bf16 %v111_v6, %v110_v4  ;;  %v112_v9 = vld [vmem:[%s358_s3 + $0x10] sm:$0xff] }
   0x4   :  { %245 = vmatpush3.bf16.msk.msra.mxu0 %vm244_vm2, %v243_v3  ;;  %v113_v10 = vld [vmem:[%s358_s3 + $0x18] sm:$0xff]  ;;  %v211_v12 = vld [vmem:[%s357_s2] ss:$0 sm:$0xff]  ;;  %vm121_vm5 = vcmask 261120   ;;  %s285_s9 = smov [#allocation2]   ;;  %vm195_vm6 = vcmask 17408  }
   0x5   :  { %248 = vmatpush3.bf16.msra.mxu1 %v247_v8  ;;  %v250_v11 = vpack.c.bf16 %v113_v10, %v112_v9  ;;  %v214_v17 = vld [vmem:[%s359_s4] ss:$0 sm:$0xff]  ;;  %s203_s10 = sshll.u32 %s285_s9, 4  ;;  %s204_s10 = int_to_ptr.vmem [resolvable:$true] %s203_s10 }
   0x6   :  { %249 = vmatprep.subr.bf16.mxu1 %v281_v2  ;;  %s257_s3 = scalar_lea.vmem %s204_s10, 32  ;;  %p262_p1 = scmp.lt.s32.totalorder %s204_s10, %s204_s10 }
   0x7   :  { %229 = vmatmul.mubr.msk.f32.vlgmr.msra.gmra.mrb[0].mxu0 %vm31_vm4, %v21_v7  ;;  %p258_p0 = scmp.ne.s32.totalorder %s204_s10, %s257_s3  ;;  %p263_p2 = scmp.lt.s32.totalorder %s257_s3, %s257_s3 }
   0x9   :  { %251 = vmatpush3.bf16.msra.mxu1 %v250_v11  ;;  %p264_p3 = por %p263_p2, %p262_p1 }
   0xb   :  { %p265_p4 = pnand %p264_p3, %p258_p0 }
  0xda   :  { %v105_v13 = vpop.f32.mrb[0].mxu0 }
  0xdb   :  { %v106_v14 = vadd.f32 %v211_v12, %v105_v13  ;;  %v230_v15 = vpop.f32.mrb[1].mxu0 }
  0xdd   :  { %v109_v16 = vmax.f32 %v106_v14, 0.0 }
  0xdf   :  { %240 = vmatmul.mubr.msk.f32.vlgmr.msra.gmra.mrb[0].mxu1 %vm121_vm5, %v109_v16 }
 0x1b2   :  { %v191_v18 = vpop.f32.mrb[0].mxu1 }
 0x1b3   :  { %v192_v19 = vadd.f32 %v214_v17, %v191_v18  ;;  %v241_v20 = vpop.f32.mrb[1].mxu1 }
 0x1b5   :  { %196 = vst.msk [vmem:[#allocation2] sm:$0x3] %vm195_vm6, %v192_v19 }
 0x1b6   :  { %268 = shalt.err (!%p265_p4)
}
 0x1b7   :  { %s269_s12 = scalar_lea.hbm %s360_s5, 32 }
 0x1b8   :  { %p270_p5 = scmp.ne.s32.totalorder %s360_s5, %s269_s12  ;;  %p273_p6 = scmp.lt.u32.totalorder %s269_s12, %s360_s5 }
 0x1ba   :  { %p275_p7 = pnand %p273_p6, %p270_p5 }
 0x1bc   :  { %278 = shalt.err (!%p275_p7)
}
 0x1bd   :  { %206 = dma.vmem_to_hbm [thread:$0]  %s204_s10, 32, %s360_s5, [#allocation3]  }
 0x1be   :  { %279 = dma.done.wait [#allocation3], 32  }
 0x1bf   :  { %280 = vsyncadd [#allocation3], 4294967264 }
 0x1c0   :  { %210 = vsyncpa [#allocation3], 1 }

</bundles_post_ra>
